<compile_context>
chip_gen: v7x
topology: tpu7x:2x2x1
jax: 0.10.0
libtpu: 0.0.40
codegen_flags: <defaults>
</compile_context>

<pallas_src>
import functools

import jax
import jax.numpy as jnp
from jax import lax
from jax.experimental import pallas as pl
from jax.experimental.pallas import tpu as pltpu

# Hyperparameters the original script reads from argparse (opt.neuron, opt.layer).
NEURON = 32
N_HIDDEN_LAYERS = 2
INPUT_SHAPE = 6
OUTPUT_SHAPE = 2

MAX_B_TILE = 4096          # upper bound on the streaming batch tile


def _single_block_max_b():
    """Batch size below which we run one un-gridded launch.

    v5e/v6e have a single TensorCore: nothing to shard, so one launch (no
    pipeline prologue/epilogue, no per-step overhead) is best up to a few
    thousand rows.  Multi-TC parts (v7x) want >=2 grid steps so the
    "parallel" batch axis can shard across cores -> keep the threshold low.
    """
    try:
        kind = jax.devices()[0].device_kind.lower()
    except Exception:
        return 1024
    single_tc = ("v5e", "v5 lite", "v5lite", "v6e", "v6 lite", "v6lite")
    return 4096 if any(s in kind for s in single_tc) else 1024


def _pick_b_tile(batch):
    """Batch tile giving an even number (>=2) of balanced grid steps."""
    steps = max(2, -(-batch // MAX_B_TILE))
    if steps % 2:
        steps += 1                      # even step count -> balanced on 2-TC parts
    tile = -(-batch // steps)
    return ((tile + 7) // 8) * 8        # sublane-align


def _fused_mlp_kernel(x_ref, *refs, n_layers, valid_rows):
    """Whole MLP in one body: MXU matmuls, VPU bias adds, EUP tanh.

    refs = (w0, b0, w1, b1, ..., w_end, b_end, o_ref).  Weights are stored
    (in_features, out_features) so each layer is y = x @ W + b.  Activations
    stay in vregs/VMEM for the entire chain.
    """
    o_ref = refs[-1]
    params = refs[:-1]
    h = x_ref[...]
    if valid_rows is not None:
        # Ragged last tile: rows past the true batch contain unspecified bits
        # (possibly NaN/Inf).  Zero them so everything stays finite; their
        # outputs are dropped by the partial writeback of the output block.
        start = pl.program_id(0) * h.shape[0]
        rows = lax.broadcasted_iota(jnp.int32, h.shape, 0) + start
        h = jnp.where(rows < valid_rows, h, 0.0)
    for i in range(n_layers):
        w = params[2 * i][...]
        b = params[2 * i + 1][...]
        # Contractions are tiny (K=6/32): MXU cost is push/drain latency,
        # not throughput -- fine once everything is fused in one launch.
        h = jnp.dot(h, w, preferred_element_type=jnp.float32) + b
        if i < n_layers - 1:
            h = jnp.tanh(h)
    o_ref[...] = h.astype(o_ref.dtype)


def _flatten_params(params):
    flat = []
    for w, b in params:
        flat.append(w)
        flat.append(b if b.ndim == 2 else b.reshape(1, -1))
    return flat


def _cost_estimate(batch, params):
    dims = [(w.shape[0], w.shape[1]) for w, _ in params]
    flops = 2 * batch * sum(fi * fo for fi, fo in dims)
    transcendentals = batch * sum(fo for _, fo in dims[:-1])
    bytes_accessed = 4 * (batch * (dims[0][0] + dims[-1][1])
                          + sum(fi * fo + fo for fi, fo in dims))
    return pl.CostEstimate(flops=int(flops),
                           transcendentals=int(transcendentals),
                           bytes_accessed=int(bytes_accessed))


def g_xy_forward(params, x):
    """Fused forward pass of G_xy.  x: (B, INPUT_SHAPE) -> (B, OUTPUT_SHAPE)."""
    B, f_in = x.shape
    flat = _flatten_params(params)
    out_f = params[-1][0].shape[1]
    n_layers = len(params)
    cost = _cost_estimate(B, params)

    if B <= _single_block_max_b():
        # Single-shot path: no grid, no pipelining machinery, everything
        # (weights + whole batch) VMEM-resident for one launch.
        kernel = functools.partial(_fused_mlp_kernel, n_layers=n_layers,
                                   valid_rows=None)
        return pl.pallas_call(
            kernel,
            out_shape=jax.ShapeDtypeStruct((B, out_f), x.dtype),
            in_specs=[pl.BlockSpec(memory_space=pltpu.MemorySpace.VMEM)]
            * (1 + len(flat)),
            out_specs=pl.BlockSpec(memory_space=pltpu.MemorySpace.VMEM),
            cost_estimate=cost,
        )(x, *flat)

    # Streaming path: tile the batch.  Only x/out stream from HBM; weights use
    # a constant index_map so they are DMA'd once and stay resident.  No
    # wrapper-side padding of x and no post-kernel slice: grid = cdiv(B, tile)
    # and the ragged last tile is masked in-kernel / partially written back.
    b_tile = _pick_b_tile(B)
    grid = pl.cdiv(B, b_tile)
    kernel = functools.partial(
        _fused_mlp_kernel, n_layers=n_layers,
        valid_rows=B if B % b_tile else None)

    in_specs = [pl.BlockSpec((b_tile, f_in), lambda i: (i, 0))]
    for arr in flat:
        in_specs.append(pl.BlockSpec(arr.shape, lambda i: (0, 0)))

    return pl.pallas_call(
        kernel,
        out_shape=jax.ShapeDtypeStruct((B, out_f), x.dtype),
        grid=(grid,),
        in_specs=in_specs,
        out_specs=pl.BlockSpec((b_tile, out_f), lambda i: (i, 0)),
        compiler_params=pltpu.CompilerParams(
            # Batch axis is embarrassingly parallel -> dual-TC sharding on v7x.
            dimension_semantics=("parallel",),
        ),
        cost_estimate=cost,
    )(x, *flat)


def init_params(key, input_shape=INPUT_SHAPE, neuron=NEURON,
                n_layers=N_HIDDEN_LAYERS, output_shape=OUTPUT_SHAPE):
    """PyTorch-style U(-1/sqrt(fan_in), 1/sqrt(fan_in)) init.

    Weights are stored (in, out) = nn.Linear.weight.T and biases as (1, out)
    (kernel-ready: no per-call reshape/pad ops).
    """
    dims = [(input_shape, neuron)] + [(neuron, neuron)] * n_layers + \
           [(neuron, output_shape)]
    params = []
    for fan_in, fan_out in dims:
        key, kw, kb = jax.random.split(key, 3)
        bound = 1.0 / jnp.sqrt(jnp.float32(fan_in))
        w = jax.random.uniform(kw, (fan_in, fan_out), jnp.float32,
                               minval=-bound, maxval=bound)
        b = jax.random.uniform(kb, (1, fan_out), jnp.float32,
                               minval=-bound, maxval=bound)
        params.append((w, b))
    return params


def g_xy_reference(params, x):
    out = x
    for i, (w, b) in enumerate(params):
        out = out @ w + b
        if i < len(params) - 1:
            out = jnp.tanh(out)
    return out


if __name__ == "__main__":
    key = jax.random.PRNGKey(0)
    key, kp, k1, k2, k3 = jax.random.split(key, 5)

    params = init_params(kp)
    fwd = jax.jit(g_xy_forward)

    # 1) Small batch: single un-gridded, fully VMEM-resident launch.
    x1 = jax.random.normal(k1, (8, INPUT_SHAPE), jnp.float32)
    o1 = jax.block_until_ready(fwd(params, x1))
    r1 = g_xy_reference(params, x1)
    assert o1.shape == (8, OUTPUT_SHAPE), o1.shape
    assert jnp.allclose(o1, r1, atol=1e-5, rtol=1e-5), \
        float(jnp.max(jnp.abs(o1 - r1)))

    # 2) Large batch, not a tile multiple: gridded path, 2 balanced tiles,
    #    ragged last block handled by the in-kernel row mask + partial writeback.
    x2 = jax.random.normal(k2, (5000, INPUT_SHAPE), jnp.float32)
    o2 = jax.block_until_ready(fwd(params, x2))
    r2 = g_xy_reference(params, x2)
    assert o2.shape == (5000, OUTPUT_SHAPE), o2.shape
    assert jnp.allclose(o2, r2, atol=1e-5, rtol=1e-5), \
        float(jnp.max(jnp.abs(o2 - r2)))

    # 3) Exact tile multiple: gridded path, no masking branch.
    x3 = jax.random.normal(k3, (8192, INPUT_SHAPE), jnp.float32)
    o3 = jax.block_until_ready(fwd(params, x3))
    r3 = g_xy_reference(params, x3)
    assert o3.shape == (8192, OUTPUT_SHAPE), o3.shape
    assert jnp.allclose(o3, r3, atol=1e-5, rtol=1e-5), \
        float(jnp.max(jnp.abs(o3 - r3)))

    print("KERNEL_OK")
</pallas_src>

<mosaic_0001>
module attributes {stable_mosaic.version = 11 : i64} {
  func.func @_fused_mlp_kernel(%arg0: memref<8x6xf32, #tpu.memory_space<vmem>>, %arg1: memref<6x32xf32, #tpu.memory_space<vmem>>, %arg2: memref<1x32xf32, #tpu.memory_space<vmem>>, %arg3: memref<32x32xf32, #tpu.memory_space<vmem>>, %arg4: memref<1x32xf32, #tpu.memory_space<vmem>>, %arg5: memref<32x32xf32, #tpu.memory_space<vmem>>, %arg6: memref<1x32xf32, #tpu.memory_space<vmem>>, %arg7: memref<32x2xf32, #tpu.memory_space<vmem>>, %arg8: memref<1x2xf32, #tpu.memory_space<vmem>>, %arg9: memref<8x2xf32, #tpu.memory_space<vmem>>) attributes {dimension_semantics = [], scalar_prefetch = 0 : i64, scratch_operands = 0 : i64, tpu.core_type = #tpu.core_type<tc>} {
    %c0 = arith.constant 0 : index
    %c0_0 = arith.constant 0 : index
    %0 = vector.load %arg0[%c0, %c0_0] : memref<8x6xf32, #tpu.memory_space<vmem>>, vector<8x6xf32>
    %c0_1 = arith.constant 0 : index
    %c0_2 = arith.constant 0 : index
    %1 = vector.load %arg1[%c0_1, %c0_2] : memref<6x32xf32, #tpu.memory_space<vmem>>, vector<6x32xf32>
    %c0_3 = arith.constant 0 : index
    %c0_4 = arith.constant 0 : index
    %2 = vector.load %arg2[%c0_3, %c0_4] : memref<1x32xf32, #tpu.memory_space<vmem>>, vector<1x32xf32>
    %cst = arith.constant dense<0.000000e+00> : vector<8x32xf32>
    %3 = tpu.matmul %0, %1, %cst {dimension_numbers = #tpu.dot_dimension_numbers<[1], [0], [0], [1], [0, 0, 1, 1], [], []>} : vector<8x6xf32>, vector<6x32xf32>, vector<8x32xf32> -> vector<8x32xf32>
    %4 = vector.broadcast %2 : vector<1x32xf32> to vector<8x32xf32>
    %5 = arith.addf %3, %4 : vector<8x32xf32>
    %6 = math.tanh %5 : vector<8x32xf32>
    %c0_5 = arith.constant 0 : index
    %c0_6 = arith.constant 0 : index
    %7 = vector.load %arg3[%c0_5, %c0_6] : memref<32x32xf32, #tpu.memory_space<vmem>>, vector<32x32xf32>
    %c0_7 = arith.constant 0 : index
    %c0_8 = arith.constant 0 : index
    %8 = vector.load %arg4[%c0_7, %c0_8] : memref<1x32xf32, #tpu.memory_space<vmem>>, vector<1x32xf32>
    %cst_9 = arith.constant dense<0.000000e+00> : vector<8x32xf32>
    %9 = tpu.matmul %6, %7, %cst_9 {dimension_numbers = #tpu.dot_dimension_numbers<[1], [0], [0], [1], [0, 0, 1, 1], [], []>} : vector<8x32xf32>, vector<32x32xf32>, vector<8x32xf32> -> vector<8x32xf32>
    %10 = vector.broadcast %8 : vector<1x32xf32> to vector<8x32xf32>
    %11 = arith.addf %9, %10 : vector<8x32xf32>
    %12 = math.tanh %11 : vector<8x32xf32>
    %c0_10 = arith.constant 0 : index
    %c0_11 = arith.constant 0 : index
    %13 = vector.load %arg5[%c0_10, %c0_11] : memref<32x32xf32, #tpu.memory_space<vmem>>, vector<32x32xf32>
    %c0_12 = arith.constant 0 : index
    %c0_13 = arith.constant 0 : index
    %14 = vector.load %arg6[%c0_12, %c0_13] : memref<1x32xf32, #tpu.memory_space<vmem>>, vector<1x32xf32>
    %cst_14 = arith.constant dense<0.000000e+00> : vector<8x32xf32>
    %15 = tpu.matmul %12, %13, %cst_14 {dimension_numbers = #tpu.dot_dimension_numbers<[1], [0], [0], [1], [0, 0, 1, 1], [], []>} : vector<8x32xf32>, vector<32x32xf32>, vector<8x32xf32> -> vector<8x32xf32>
    %16 = vector.broadcast %14 : vector<1x32xf32> to vector<8x32xf32>
    %17 = arith.addf %15, %16 : vector<8x32xf32>
    %18 = math.tanh %17 : vector<8x32xf32>
    %c0_15 = arith.constant 0 : index
    %c0_16 = arith.constant 0 : index
    %19 = vector.load %arg7[%c0_15, %c0_16] : memref<32x2xf32, #tpu.memory_space<vmem>>, vector<32x2xf32>
    %c0_17 = arith.constant 0 : index
    %c0_18 = arith.constant 0 : index
    %20 = vector.load %arg8[%c0_17, %c0_18] : memref<1x2xf32, #tpu.memory_space<vmem>>, vector<1x2xf32>
    %cst_19 = arith.constant dense<0.000000e+00> : vector<8x2xf32>
    %21 = tpu.matmul %18, %19, %cst_19 {dimension_numbers = #tpu.dot_dimension_numbers<[1], [0], [0], [1], [0, 0, 1, 1], [], []>} : vector<8x32xf32>, vector<32x2xf32>, vector<8x2xf32> -> vector<8x2xf32>
    %22 = vector.broadcast %20 : vector<1x2xf32> to vector<8x2xf32>
    %23 = arith.addf %21, %22 : vector<8x2xf32>
    %c0_20 = arith.constant 0 : index
    %c0_21 = arith.constant 0 : index
    %24 = vector.load %arg9[%c0_20, %c0_21] : memref<8x2xf32, #tpu.memory_space<vmem>>, vector<8x2xf32>
    tpu.vector_store %arg9[%c0_20, %c0_21], %23 {strides = array<i32>} : memref<8x2xf32, #tpu.memory_space<vmem>>, vector<8x2xf32>,
    return
  }
}

</mosaic_0001>

<bundles_post_ra>
// kernel: g_xy_forward.1
= control target key start
LH: loop header
LB: loop body
LE: loop exit
PB: predicated region body
PF: predicated region fallthrough
CT: control target
= control target key end

     0   :  { %14 = vsyncpa [#allocation3], 0  ;;  %s689_s0 = inlined_call_operand.vmem [shape: f32[8,6], index: 0, kind: input, shape index: {}]   ;;  %s690_s1 = inlined_call_operand.hbm [shape: f32[6,32], index: 1, kind: input, shape index: {}]   ;;  %s691_s2 = inlined_call_operand.vmem [shape: f32[1,32], index: 2, kind: input, shape index: {}]   ;;  %s692_s3 = inlined_call_operand.vmem [shape: f32[32,32], index: 3, kind: input, shape index: {}]   ;;  %s693_s4 = inlined_call_operand.vmem [shape: f32[1,32], index: 4, kind: input, shape index: {}]   ;;  %s694_s5 = inlined_call_operand.hbm [shape: f32[32,32], index: 5, kind: input, shape index: {}]   ;;  %s695_s6 = inlined_call_operand.vmem [shape: f32[1,32], index: 6, kind: input, shape index: {}]   ;;  %s696_s7 = inlined_call_operand.vmem [shape: f32[32,2], index: 7, kind: input, shape index: {}]   ;;  %s697_s8 = inlined_call_operand.vmem [shape: f32[1,2], index: 8, kind: input, shape index: {}]   ;;  %s698_s9 = inlined_call_operand.vmem [shape: f32[8,2], index: 9, kind: output, shape index: {}]  }
   0x1   :  { %15 = vsyncpa [#allocation5], 0  ;;  %s552_s30 = smov [#allocation2]   ;;  %s553_s11 = smov [#allocation4]  }
   0x2   :  { %s24_s10 = sshll.u32 %s552_s30, 4  ;;  %s39_s12 = sshll.u32 %s553_s11, 4  ;;  %s25_s10 = int_to_ptr.vmem [resolvable:$true] %s24_s10  ;;  %s609_s12 = int_to_ptr.vmem [resolvable:$true] %s39_s12 }
   0x3   :  { %s504_s15 = scalar_lea.hbm %s690_s1, 128 }
   0x4   :  { %p505_p0 = scmp.ne.s32.totalorder %s690_s1, %s504_s15  ;;  %p508_p1 = scmp.lt.u32.totalorder %s504_s15, %s690_s1 }
   0x6   :  { %p510_p2 = pnand %p508_p1, %p505_p0 }
   0x8   :  { %513 = shalt.err (!%p510_p2)
}
   0x9   :  { %s514_s20 = scalar_lea.vmem %s25_s10, 128  ;;  %p519_p4 = scmp.lt.s32.totalorder %s25_s10, %s25_s10 }
   0xa   :  { %p515_p3 = scmp.ne.s32.totalorder %s25_s10, %s514_s20  ;;  %p520_p5 = scmp.lt.s32.totalorder %s514_s20, %s514_s20 }
   0xc   :  { %p521_p6 = por %p520_p5, %p519_p4 }
   0xe   :  { %p522_p7 = pnand %p521_p6, %p515_p3 }
  0x10   :  { %525 = shalt.err (!%p522_p7)
}
  0x11   :  { %27 = dma.hbm_to_vmem [thread:$0]  %s690_s1, 128, %s25_s10, [#allocation3]  }
  0x12   :  { %s526_s25 = scalar_lea.hbm %s694_s5, 512 }
  0x13   :  { %p527_p8 = scmp.ne.s32.totalorder %s694_s5, %s526_s25  ;;  %p530_p9 = scmp.lt.u32.totalorder %s526_s25, %s694_s5 }
  0x15   :  { %p532_p10 = pnand %p530_p9, %p527_p8 }
  0x17   :  { %535 = shalt.err (!%p532_p10)
}
  0x18   :  { %s536_s30 = scalar_lea.vmem %s609_s12, 512  ;;  %p541_p12 = scmp.lt.s32.totalorder %s609_s12, %s609_s12 }
  0x19   :  { %p537_p11 = scmp.ne.s32.totalorder %s609_s12, %s536_s30  ;;  %p542_p13 = scmp.lt.s32.totalorder %s536_s30, %s536_s30 }
  0x1b   :  { %p543_p0 = por %p542_p13, %p541_p12 }
  0x1d   :  { %p544_p1 = pnand %p543_p0, %p537_p11 }
  0x1f   :  { %547 = shalt.err (!%p544_p1)
}
  0x20   :  { %s554_s1 = smov 128   ;;  %s555_s10 = smov 8  }
  0x21   :  { %45 = dma.hbm_to_vmem [thread:$0]  %s694_s5, 512, %s609_s12, [#allocation5], %s554_s1, %s554_s1, %s555_s10  }
  0x22   :  { %548 = dma.done.wait [#allocation3], 128  }
  0x23   :  { %549 = vsyncadd [#allocation3], 4294967168 }
  0x24   :  { %550 = dma.done.wait [#allocation5], 512  }
  0x25   :  { %551 = vsyncadd [#allocation5], 4294966784  ;;  %v556_v0 = vmov 0.0   ;;  %vm557_vm0 = vmmov 0   ;;  %vm71_vm1 = vcmask 1045504   ;;  %vm67_vm2 = vcmask 48128  }
  0x26   :  { %435 = vmatprep.subr.mxu0 %v556_v0  ;;  %437 = vmatprep.mubr.msk.f32.mxu0 %vm557_vm0, %v556_v0  ;;  %v59_v1 = vld [vmem:[#allocation2] sm:$0x3f]  ;;  %v147_v4 = vld [vmem:[%s692_s3 + $0x8] sm:$0xff]  ;;  %v148_v5 = vld [vmem:[%s692_s3 + $0x10] sm:$0xff]  ;;  %v558_v6 = vmov 0.0|0.0   ;;  %vm157_vm3 = vcmask 261120  }
  0x27   :  { %448 = vmatprep.mubr.msk.f32.mxu1 %vm557_vm0, %v556_v0  ;;  %v58_v2 = vld [vmem:[%s689_s0] sm:$0xff]  ;;  %436 = vmatpush3.msk.msra.mxu0 %vm71_vm1, %v59_v1  ;;  %v149_v8 = vld [vmem:[%s692_s3 + $0x18] sm:$0xff]  ;;  %v232_v15 = vld [vmem:[#allocation4] sm:$0xff]  ;;  %vm401_vm4 = vcmask 15360  }
  0x28   :  { %438 = vmatmul.mubr.msk.f32.vlgmr.msra.gmra.mrb[0].mxu0 %vm67_vm2, %v58_v2  ;;  %v146_v3 = vld [vmem:[%s692_s3] sm:$0xff]  ;;  %473 = vmatprep.subr.bf16.mxu1 %v558_v6  ;;  %v477_v9 = vpack.c.bf16 %v149_v8, %v148_v5  ;;  %v233_v16 = vld [vmem:[#allocation4 + $0x8] sm:$0xff]  ;;  %v234_v17 = vld [vmem:[#allocation4 + $0x10] sm:$0xff] }
  0x29   :  { %459 = vmatprep.mubr.msk.f32.mxu0 %vm557_vm0, %v556_v0  ;;  %v474_v7 = vpack.c.bf16 %v147_v4, %v146_v3  ;;  %479 = vmatprep.subr.bf16.mxu0 %v558_v6  ;;  %v409_v10 = vld [vmem:[%s691_s2] ss:$0 sm:$0xff]  ;;  %v480_v18 = vpack.c.bf16 %v233_v16, %v232_v15  ;;  %v318_v27 = vld [vmem:[%s696_s7 + $0x8] sm:$0xff]  ;;  %v319_v28 = vld [vmem:[%s696_s7 + $0x10] sm:$0xff] }
  0x2a   :  { %v235_v19 = vld [vmem:[#allocation4 + $0x18] sm:$0xff]  ;;  %v320_v30 = vld [vmem:[%s696_s7 + $0x18] sm:$0xff] }
  0x2b   :  { %475 = vmatpush3.bf16.msra.mxu1 %v474_v7  ;;  %481 = vmatpush3.bf16.msra.mxu0 %v480_v18  ;;  %v483_v20 = vpack.c.bf16 %v235_v19, %v234_v17  ;;  %v412_v21 = vld [vmem:[%s693_s4] ss:$0 sm:$0xff]  ;;  %v489_v31 = vpack.c.bf16 %v320_v30, %v319_v28 }
  0x2c   :  { %476 = vmatprep.subr.bf16.mxu1 %v558_v6  ;;  %482 = vmatprep.subr.bf16.mxu0 %v558_v6  ;;  %v317_v26 = vld [vmem:[%s696_s7] sm:$0xff] }
  0x2d   :  { %v486_v29 = vpack.c.bf16 %v318_v27, %v317_v26  ;;  %v414_v32 = vld [vmem:[%s695_s6] ss:$0 sm:$0xff] }
  0x2e   :  { %v416_v37 = vld [vmem:[%s697_s8] ss:$0 sm:$0xff] }
  0x2f   :  { %478 = vmatpush3.bf16.msra.mxu1 %v477_v9  ;;  %484 = vmatpush3.bf16.msra.mxu0 %v483_v20 }
  0x30   :  { %485 = vmatprep.subr.bf16.mxu1 %v558_v6 }
  0xfb   :  { %v141_v11 = vpop.f32.mrb[0].mxu0 }
  0xfc   :  { %v142_v12 = vadd.f32 %v409_v10, %v141_v11  ;;  %v439_v13 = vpop.f32.mrb[1].mxu0 }
  0xfe   :  { %498 = vtanh.f32 %v142_v12 }
 0x108   :  { %v499_v14 = vpop.eup %498 }
 0x109   :  { %449 = vmatmul.mubr.msk.f32.vlgmr.msra.gmra.mrb[0].mxu1 %vm157_vm3, %v499_v14 }
 0x10a   :  { %470 = vmatprep.mubr.msk.f32.mxu1 %vm557_vm0, %v556_v0  ;;  %487 = vmatpush3.bf16.msra.mxu1 %v486_v29 }
 0x10b   :  { %488 = vmatprep.subr.bf16.mxu1 %v558_v6 }
 0x10e   :  { %490 = vmatpush3.bf16.msra.mxu1 %v489_v31 }
 0x1dc   :  { %v227_v22 = vpop.f32.mrb[0].mxu1 }
 0x1dd   :  { %v228_v23 = vadd.f32 %v412_v21, %v227_v22  ;;  %v450_v24 = vpop.f32.mrb[1].mxu1 }
 0x1df   :  { %500 = vtanh.f32 %v228_v23 }
 0x1e9   :  { %v501_v25 = vpop.eup %500 }
 0x1ea   :  { %460 = vmatmul.mubr.msk.f32.vlgmr.msra.gmra.mrb[2].mxu0 %vm157_vm3, %v501_v25 }
 0x2bd   :  { %v312_v33 = vpop.f32.mrb[2].mxu0 }
 0x2be   :  { %v313_v34 = vadd.f32 %v414_v32, %v312_v33  ;;  %v461_v35 = vpop.f32.mrb[3].mxu0 }
 0x2c0   :  { %502 = vtanh.f32 %v313_v34 }
 0x2ca   :  { %v503_v36 = vpop.eup %502 }
 0x2cb   :  { %471 = vmatmul.mubr.msk.f32.vlgmr.msra.gmra.mrb[2].mxu1 %vm157_vm3, %v503_v36 }
 0x39e   :  { %v397_v38 = vpop.f32.mrb[2].mxu1 }
 0x39f   :  { %v398_v39 = vadd.f32 %v416_v37, %v397_v38  ;;  %v472_v40 = vpop.f32.mrb[3].mxu1 }
 0x3a1   :  { %402 = vst.msk [vmem:[%s698_s9] sm:$0xff] %vm401_vm4, %v398_v39 }
 0x3a2   :  { %407 = vsyncpa [#allocation3], 1 }
 0x3a3   :  { %408 = vsyncpa [#allocation5], 1 }

</bundles_post_ra>
